<compile_context>
chip_gen: v5e
topology: v5e:2x2
jax: 0.10.0
libtpu: 0.0.40
codegen_flags: <defaults>
</compile_context>

<pallas_src>
import jax
import jax.numpy as jnp
from jax.experimental import pallas as pl
from jax.experimental.pallas import tpu as pltpu


def _round_up(v, m):
    return (v + m - 1) // m * m


def _cdiv(a, b):
    return -(-a // b)


def _tpu_info():
    """Best-effort hardware query (robust if the query is unavailable)."""
    kind = ""
    try:
        kind = jax.devices()[0].device_kind.lower()
    except Exception:
        pass
    is_v7 = "v7" in kind
    try:
        vmem_cap = int(pltpu.get_tpu_info().vmem_capacity_bytes)
    except Exception:
        vmem_cap = (64 if is_v7 else 128) * 2**20
    return is_v7, vmem_cap


def _make_cls_head_kernel(F, tk, k_per_split, ragged):
    def kernel(x_ref, w_ref, o_ref):
        s = pl.program_id(0)      # K-split index (TensorCore partition)
        k = pl.program_id(2)      # reduction step within this split

        @pl.when(k == 0)
        def _():
            o_ref[...] = jnp.zeros_like(o_ref)

        x_tile = x_ref[...]
        if ragged:
            # Mask the ragged K tail AND any tile whose intended offset lies
            # fully past F (created by rounding n_k up to the split count).
            # Do NOT rely on zero-padded W to cancel garbage x (NaN*0 = NaN).
            k_off = (s * k_per_split + k) * tk
            col = jax.lax.broadcasted_iota(jnp.int32, x_tile.shape, 1) + k_off
            x_tile = jnp.where(col < F, x_tile, jnp.zeros_like(x_tile))

        # x_tile: (bm, tk), w_ref: (num_cls, tk) -> contract over K of both
        # (W stays in native Linear layout; no transpose copy needed).
        o_ref[...] += jax.lax.dot_general(
            x_tile,
            w_ref[...],
            dimension_numbers=(((1,), (1,)), ((), ())),
            preferred_element_type=jnp.float32,
        )

    return kernel


def cls_head_forward(x, weight, bias, *, tk=None, num_k_splits=None, bm=None):
    """
    x:      (B, T, C, H, W)            (any float dtype; streamed natively)
    weight: (num_cls, F), F = T*C*H*W  (native nn.Linear layout)
    bias:   (num_cls,)
    returns (B, num_cls) in x.dtype
    """
    B = int(x.shape[0])
    F = 1
    for d in x.shape[1:]:
        F *= int(d)
    num_cls = int(weight.shape[0])

    # Flatten exactly like torch's x.view(B, -1).  No dtype upcast, no pad of x.
    x2d = x.reshape(B, F)
    w2d = weight.astype(x2d.dtype)          # tiny cast; MXU accumulates in f32

    is_v7, vmem_cap = _tpu_info()
    dtype_bytes = jnp.dtype(x2d.dtype).itemsize

    # ---- batch blocking ("parallel"; bounds VMEM independently of tk) -----
    if bm is None:
        bm = B if B <= 256 else 256
    bm = min(int(bm), B)
    if bm < B:
        bm = _round_up(bm, 8)               # sublane-aligned partial-B blocks
    n_b = _cdiv(B, bm)

    # ---- K split across TensorCores (only worth it on 2-TC v7x) -----------
    if num_k_splits is None:
        num_k_splits = 2 if is_v7 else 1

    # ---- K tile size: amortize ~0.35us/step, fit generation-aware VMEM ----
    bm_pad = _round_up(bm, 8)
    ncls_pad = _round_up(num_cls, 8)
    out_bytes = 2 * bm_pad * _round_up(num_cls, 128) * 4       # f32 out block
    per_tk_bytes = 2 * (bm_pad + ncls_pad) * dtype_bytes        # dbl-buf x + W
    tile_budget = int(min(vmem_cap * 0.625, 100 * 2**20))       # ~40MiB v7x
    tk_vmem_max = max(128, ((tile_budget - out_bytes) // per_tk_bytes) // 128 * 128)

    if tk is None:
        # Per-step DMA target: ~4 MiB (v5e/v6e), ~8 MiB (v7x, 3.2 TB/s HBM).
        target_step_bytes = (8 if is_v7 else 4) * 2**20
        tk = target_step_bytes // max(1, (bm_pad + ncls_pad) * dtype_bytes)
    tk = max(int(tk), 1)
    tk_cap = min(tk, tk_vmem_max)
    if tk_cap >= F:
        tk_eff = F                                   # single tile == full K dim
    else:
        tk_eff = min(max(128, (tk_cap // 128) * 128), F)

    n_k = _cdiv(F, tk_eff)
    num_k_splits = max(1, min(int(num_k_splits), n_k))
    n_k = _round_up(n_k, num_k_splits)
    k_per_split = n_k // num_k_splits
    ragged = (n_k * tk_eff) != F

    # Only W is padded (num_cls rows -> negligible HBM traffic); x's tail is
    # masked in-kernel instead of materializing a padded copy of x.
    F_pad = n_k * tk_eff
    if F_pad != F:
        w2d = jnp.pad(w2d, ((0, 0), (0, F_pad - F)))

    last_x_block = (F - 1) // tk_eff      # keep x DMA block starts in-bounds

    footprint = per_tk_bytes * tk_eff + out_bytes
    vmem_limit = int(min(max(2 * footprint, 32 * 2**20), vmem_cap - 8 * 2**20))
    vmem_limit = max(vmem_limit, footprint + (2 << 20))

    kernel = _make_cls_head_kernel(F, tk_eff, k_per_split, ragged)

    def x_map(s, b, k):
        # Clamp so rounding-induced extra tiles never start past the array;
        # their contents are zeroed in-kernel by the ragged mask anyway.
        return (b, jnp.minimum(s * k_per_split + k, last_x_block))

    def w_map(s, b, k):
        return (0, s * k_per_split + k)

    partials = pl.pallas_call(
        kernel,
        out_shape=jax.ShapeDtypeStruct((num_k_splits, B, num_cls), jnp.float32),
        grid_spec=pltpu.PrefetchScalarGridSpec(
            num_scalar_prefetch=0,
            grid=(num_k_splits, n_b, k_per_split),
            in_specs=[
                # x K-tile: (bm, tk) — long contiguous rows, native dtype.
                pl.BlockSpec((bm, tk_eff), x_map),
                # W K-tile in native (num_cls, F) layout — lane-dense DMA.
                pl.BlockSpec((num_cls, tk_eff), w_map),
            ],
            # One VMEM-resident f32 partial-sum block per (split, batch block).
            out_specs=pl.BlockSpec((None, bm, num_cls),
                                   lambda s, b, k: (s, b, 0)),
        ),
        compiler_params=pltpu.CompilerParams(
            dimension_semantics=("parallel", "parallel", "arbitrary"),
            vmem_limit_bytes=vmem_limit,
        ),
    )(x2d, w2d)

    # Tiny wrapper-side epilogue: reduce per-split partials, add bias, cast.
    out = partials.sum(axis=0) + bias.astype(jnp.float32)[None, :]
    return out.astype(x.dtype)


if __name__ == "__main__":
    key = jax.random.PRNGKey(0)

    def make_case(k, B, T, C, H, W, num_cls):
        F = T * C * H * W
        kx, kw, kb = jax.random.split(k, 3)
        x = jax.random.normal(kx, (B, T, C, H, W), dtype=jnp.float32)
        bound = 1.0 / (F ** 0.5)   # nn.Linear default init range
        w = jax.random.uniform(kw, (num_cls, F), minval=-bound, maxval=bound,
                               dtype=jnp.float32)
        b = jax.random.uniform(kb, (num_cls,), minval=-bound, maxval=bound,
                               dtype=jnp.float32)
        ref = x.reshape(B, -1) @ w.T + b
        return x, w, b, ref

    k1, k2 = jax.random.split(key)

    # Case 1: canonical ClsHead-style shape (F = 512, num_cls = 3).
    x, w, b, ref = make_case(k1, 2, 2, 4, 8, 8, 3)

    # Auto tiling: F fits in a single K tile (effectively gridless).
    out = jax.block_until_ready(cls_head_forward(x, w, b))
    assert out.shape == ref.shape
    assert jnp.allclose(out, ref, atol=1e-4, rtol=1e-4), "mismatch (auto)"

    # Multi-step K reduction path.
    out = jax.block_until_ready(cls_head_forward(x, w, b, tk=128, num_k_splits=1))
    assert jnp.allclose(out, ref, atol=1e-4, rtol=1e-4), "mismatch (tk=128)"

    # Ragged K tail mask + 2-way K split path.
    out = jax.block_until_ready(cls_head_forward(x, w, b, tk=384, num_k_splits=2))
    assert jnp.allclose(out, ref, atol=1e-4, rtol=1e-4), "mismatch (ragged split)"

    # Split rounding that creates fully out-of-range K tiles (masked in-kernel).
    out = jax.block_until_ready(cls_head_forward(x, w, b, tk=128, num_k_splits=3))
    assert jnp.allclose(out, ref, atol=1e-4, rtol=1e-4), "mismatch (split pad)"

    # Case 2: F not a multiple of 128 (true ragged tail, auto + tiled paths).
    x2, w2, b2, ref2 = make_case(k2, 3, 2, 3, 5, 7, 5)
    out2 = jax.block_until_ready(cls_head_forward(x2, w2, b2))
    assert jnp.allclose(out2, ref2, atol=1e-4, rtol=1e-4), "mismatch (ragged F)"
    out2 = jax.block_until_ready(cls_head_forward(x2, w2, b2, tk=128))
    assert jnp.allclose(out2, ref2, atol=1e-4, rtol=1e-4), "mismatch (ragged F tiled)"

    print("KERNEL_OK")
</pallas_src>

<mosaic_0001>
module attributes {stable_mosaic.version = 11 : i64} {
  func.func @kernel(%arg0: i32, %arg1: i32, %arg2: i32, %arg3: memref<2x512xf32, #tpu.memory_space<vmem>>, %arg4: memref<3x512xf32, #tpu.memory_space<vmem>>, %arg5: memref<1x2x3xf32, #tpu.memory_space<vmem>>) attributes {dimension_semantics = [#tpu.dimension_semantics<parallel>, #tpu.dimension_semantics<parallel>, #tpu.dimension_semantics<arbitrary>], iteration_bounds = array<i64: 1, 1, 1>, scalar_prefetch = 0 : i64, scratch_operands = 0 : i64, tpu.core_type = #tpu.core_type<tc>, window_params = [{transform_indices = @transform_0, window_bounds = array<i64: 2, 512>}, {transform_indices = @transform_1, window_bounds = array<i64: 3, 512>}, {transform_indices = @transform_2, window_bounds = array<i64: 1, 2, 3>}]} {
    %c0_i32 = arith.constant 0 : i32
    %0 = arith.cmpi eq, %arg2, %c0_i32 : i32
    %1 = arith.extui %0 : i1 to i32
    %c0_i32_0 = arith.constant 0 : i32
    %2 = arith.cmpi ne, %1, %c0_i32_0 : i32
    scf.if %2 {
      %cst_10 = arith.constant 0.000000e+00 : f32
      %12 = vector.broadcast %cst_10 : f32 to vector<2x3xf32>
      %c0_11 = arith.constant 0 : index
      %c0_12 = arith.constant 0 : index
      %c0_13 = arith.constant 0 : index
      %13 = vector.load %arg5[%c0_11, %c0_12, %c0_13] : memref<1x2x3xf32, #tpu.memory_space<vmem>>, vector<1x2x3xf32>
      %14 = vector.shape_cast %13 : vector<1x2x3xf32> to vector<2x3xf32>
      %15 = vector.shape_cast %12 : vector<2x3xf32> to vector<1x2x3xf32>
      tpu.vector_store %arg5[%c0_11, %c0_12, %c0_13], %15 {strides = array<i32>} : memref<1x2x3xf32, #tpu.memory_space<vmem>>, vector<1x2x3xf32>,
    } else {
    }
    %c0 = arith.constant 0 : index
    %c0_1 = arith.constant 0 : index
    %3 = vector.load %arg3[%c0, %c0_1] : memref<2x512xf32, #tpu.memory_space<vmem>>, vector<2x512xf32>
    %c0_2 = arith.constant 0 : index
    %c0_3 = arith.constant 0 : index
    %c0_4 = arith.constant 0 : index
    %4 = vector.load %arg5[%c0_2, %c0_3, %c0_4] : memref<1x2x3xf32, #tpu.memory_space<vmem>>, vector<1x2x3xf32>
    %5 = vector.shape_cast %4 : vector<1x2x3xf32> to vector<2x3xf32>
    %c0_5 = arith.constant 0 : index
    %c0_6 = arith.constant 0 : index
    %6 = vector.load %arg4[%c0_5, %c0_6] : memref<3x512xf32, #tpu.memory_space<vmem>>, vector<3x512xf32>
    %cst = arith.constant dense<0.000000e+00> : vector<2x3xf32>
    %7 = tpu.matmul %3, %6, %cst {dimension_numbers = #tpu.dot_dimension_numbers<[1], [1], [0], [0], [0, 0, 1, 0], [], []>} : vector<2x512xf32>, vector<3x512xf32>, vector<2x3xf32> -> vector<2x3xf32>
    %8 = arith.addf %5, %7 : vector<2x3xf32>
    %c0_7 = arith.constant 0 : index
    %c0_8 = arith.constant 0 : index
    %c0_9 = arith.constant 0 : index
    %9 = vector.load %arg5[%c0_7, %c0_8, %c0_9] : memref<1x2x3xf32, #tpu.memory_space<vmem>>, vector<1x2x3xf32>
    %10 = vector.shape_cast %9 : vector<1x2x3xf32> to vector<2x3xf32>
    %11 = vector.shape_cast %8 : vector<2x3xf32> to vector<1x2x3xf32>
    tpu.vector_store %arg5[%c0_7, %c0_8, %c0_9], %11 {strides = array<i32>} : memref<1x2x3xf32, #tpu.memory_space<vmem>>, vector<1x2x3xf32>,
    return
  }
  func.func @transform_0(%arg0: i32, %arg1: i32, %arg2: i32) -> (i32, i32) {
    %c1_i32 = arith.constant 1 : i32
    %0 = arith.muli %arg0, %c1_i32 : i32
    %1 = arith.addi %0, %arg2 : i32
    %c0_i32 = arith.constant 0 : i32
    %2 = arith.minsi %1, %c0_i32 : i32
    %c0_i32_0 = arith.constant 0 : i32
    return %arg1, %2 : i32, i32
  }
  func.func @transform_1(%arg0: i32, %arg1: i32, %arg2: i32) -> (i32, i32) {
    %c1_i32 = arith.constant 1 : i32
    %0 = arith.muli %arg0, %c1_i32 : i32
    %1 = arith.addi %0, %arg2 : i32
    %c0_i32 = arith.constant 0 : i32
    %c0_i32_0 = arith.constant 0 : i32
    return %c0_i32, %1 : i32, i32
  }
  func.func @transform_2(%arg0: i32, %arg1: i32, %arg2: i32) -> (i32, i32, i32) {
    %c0_i32 = arith.constant 0 : i32
    %c0_i32_0 = arith.constant 0 : i32
    return %arg0, %arg1, %c0_i32 : i32, i32, i32
  }
}

</mosaic_0001>

<bundles_post_ra>
// kernel: tpu_custom_call.1
= control target key start
LH: loop header
LB: loop body
LE: loop exit
PB: predicated region body
PF: predicated region fallthrough
CT: control target
= control target key end

     0   :  { %7 = vsyncpa [#allocation3], 0  ;;  %s304_s0 = inlined_call_operand.hbm [shape: f32[2,512], index: 0, kind: input, shape index: {}]   ;;  %s305_s1 = inlined_call_operand.hbm [shape: f32[3,512], index: 1, kind: input, shape index: {}]   ;;  %s306_s2 = inlined_call_operand.hbm [shape: f32[1,2,3], index: 2, kind: output, shape index: {}]  }
   0x1   :  { %8 = vsyncpa [#allocation6], 0 }
   0x2   :  { %9 = vsyncpa [#allocation4], 0  ;;  %s21_s11 = sshll.u32 %s304_s0, 4  ;;  %s274_s12 = smov [#allocation2]   ;;  %s22_s11 = int_to_ptr.hbm [resolvable:$true] %s21_s11 }
   0x3   :  { %s23_s13 = sshll.u32 %s274_s12, 4  ;;  %s36_s16 = sshll.u32 %s305_s1, 4  ;;  %s24_s13 = int_to_ptr.vmem [resolvable:$true] %s23_s13  ;;  %s37_s16 = int_to_ptr.hbm [resolvable:$true] %s36_s16 }
   0x4   :  { %26 = dma.hbm_to_vmem [thread:$0]  %s22_s11, 128, %s24_s13, [#allocation3]  }
   0x5   :  { %s275_s17 = smov [#allocation5]  }
   0x6   :  { %s38_s18 = sshll.u32 %s275_s17, 4  ;;  %s39_s18 = int_to_ptr.vmem [resolvable:$true] %s38_s18 }
   0x7   :  { %41 = dma.hbm_to_vmem [thread:$0]  %s37_s16, 256, %s39_s18, [#allocation6]  }
   0x8   :  { %268 = dma.done.wait [#allocation3], 128  }
   0x9   :  { %269 = vsyncadd [#allocation3], 4294967168 }
   0xa   :  { %270 = dma.done.wait [#allocation6], 256  }
   0xb   :  { %271 = vsyncadd [#allocation6], 4294967040  ;;  %v62_v0 = vld [vmem:[#allocation2] sm:$0xff]  ;;  %v65_v1 = vld [vmem:[#allocation5 + $0x8] sm:$0x77]  ;;  %vm60_vm0 = vcmask 17408  }
   0xc   :  { %67 = vst [vmem:[#allocation1] ss:$4 sm:$0xff] %v62_v0  ;;  %v64_v2 = vld [vmem:[#allocation5] sm:$0x77]  ;;  %v276_v11 = vmov 0.0   ;;  %s277_s0 = smov [#allocation7]  }
   0xd   :  { %61 = vst.msk [vmem:[#allocation7] sm:$0x3] %vm60_vm0, %v276_v11  ;;  %s177_s1 = sshll.u32 %s277_s0, 4  ;;  %s179_s21 = sshll.u32 %s306_s2, 4  ;;  %s178_s1 = int_to_ptr.vmem [resolvable:$true] %s177_s1  ;;  %s180_s21 = int_to_ptr.hbm [resolvable:$true] %s179_s21 }
  0x13   :  { %v70_v3 = vld.sshfl [vmem:[#allocation1 + $0x10] sm:$0xff pattern:$0x73625140]  ;;  %v71_v4 = vld.sshfl [vmem:[#allocation1 + $0x18] sm:$0xff pattern:$0x73625140] }
  0x14   :  { %80 = vst [vmem:[#allocation1 + $0x10] ss:$2 sm:$0xff] %v65_v1  ;;  %v68_v5 = vld.sshfl [vmem:[#allocation1] sm:$0xff pattern:$0x73625140] }
  0x15   :  { %v69_v6 = vld.sshfl [vmem:[#allocation1 + $0x8] sm:$0xff pattern:$0x73625140]  ;;  %v63_v18 = vld [vmem:[#allocation7] sm:$0x3] }
  0x16   :  { %78 = vst [vmem:[#allocation1] ss:$2 sm:$0xff] %v64_v2 }
  0x1b   :  { %v83_v7 = vld.sshfl [vmem:[#allocation1 + $0x10] sm:$0xff pattern:$0x75316420]  ;;  %v84_v8 = vld.sshfl [vmem:[#allocation1 + $0x18] sm:$0xff pattern:$0x75316420] }
  0x1c   :  { %144 = vmatpush.xpose.msra.mxu2 %v83_v7  ;;  %164 = vmatpush.xpose.msra.mxu3 %v84_v8 }
  0x1d   :  { %v81_v9 = vld.sshfl [vmem:[#allocation1] sm:$0xff pattern:$0x75316420]  ;;  %v82_v10 = vld.sshfl [vmem:[#allocation1 + $0x8] sm:$0xff pattern:$0x75316420] }
  0x1e   :  { %104 = vmatpush.xpose.msra.mxu0 %v81_v9  ;;  %124 = vmatpush.xpose.msra.mxu1 %v82_v10 }
  0x1f   :  { %145 = vmatmul.f32.vlgmr.msra.gmra.mxu2 %v70_v3  ;;  %165 = vmatmul.f32.vlgmr.msra.gmra.mxu3 %v71_v4 }
  0x21   :  { %105 = vmatmul.f32.vlgmr.msra.gmra.mxu0 %v68_v5  ;;  %125 = vmatmul.f32.vlgmr.msra.gmra.mxu1 %v69_v6 }
  0x9e   :  { %v106_v12 = vpop.f32.mrf.mxu0  ;;  %v126_v13 = vpop.f32.mrf.mxu1 }
  0x9f   :  { %v127_v14 = vadd.f32 %v126_v13, %v106_v12 }
  0xa2   :  { %v146_v15 = vpop.f32.mrf.mxu2  ;;  %v166_v16 = vpop.f32.mrf.mxu3 }
  0xa3   :  { %v147_v17 = vadd.f32 %v146_v15, %v127_v14 }
  0xa5   :  { %v167_v19 = vadd.f32 %v166_v16, %v147_v17 }
  0xa7   :  { %v169_v20 = vadd.f32 %v167_v19, %v63_v18 }
  0xa9   :  { %171 = vst.msk [vmem:[#allocation7] sm:$0x3] %vm60_vm0, %v169_v20 }
  0xaa   :  { %182 = dma.vmem_to_hbm [thread:$0]  %s178_s1, 32, %s180_s21, [#allocation4]  }
  0xab   :  { %272 = dma.done.wait [#allocation4], 32  }
  0xac   :  { %273 = vsyncadd [#allocation4], 4294967264 }
  0xad   :  { %187 = vsyncpa [#allocation3], 1 }
  0xae   :  { %188 = vsyncpa [#allocation6], 1 }
  0xaf   :  { %189 = vsyncpa [#allocation4], 1 }

</bundles_post_ra>
